<compile_context>
chip_gen: v6e
topology: v6e:2x2x1
jax: 0.10.0
libtpu: 0.0.40
codegen_flags: <defaults>
</compile_context>

<pallas_src>
import jax
import jax.numpy as jnp
from jax.experimental import pallas as pl
from jax.experimental.pallas import tpu as pltpu


LEAKY_SLOPE = 0.01  # F.leaky_relu default negative_slope


def _leaky_relu(x):
    return jnp.where(x > 0, x, LEAKY_SLOPE * x)


def _round_up(x, m):
    return ((x + m - 1) // m) * m


def value_net_kernel(s_ref, a_ref, w1s_ref, w1a_ref, b1_ref,
                     w2_ref, b2_ref, w3_ref, b3_ref, o_ref):
    w_dtype = w1s_ref.dtype

    # Layer 1: fused "concat" -> split matmul (x_s @ W1s + x_a @ W1a + b1).
    h1 = (jnp.dot(s_ref[...].astype(w_dtype), w1s_ref[...],
                  preferred_element_type=jnp.float32)
          + jnp.dot(a_ref[...].astype(w_dtype), w1a_ref[...],
                    preferred_element_type=jnp.float32)
          + b1_ref[...])
    h1 = _leaky_relu(h1)

    # Layer 2.
    h2 = (jnp.dot(h1.astype(w_dtype), w2_ref[...],
                  preferred_element_type=jnp.float32)
          + b2_ref[...])
    h2 = _leaky_relu(h2)

    # Layer 3 (out_features == 1), computed lane-dense:
    #   (1, H) contracted with (tile_b, H) over H  ->  (1, tile_b)
    # so the output tile is lane-major (dense vreg stores) instead of a
    # (tile_b, 1) column of masked partial stores.
    out = jax.lax.dot_general(
        w3_ref[...], h2.astype(w_dtype),
        dimension_numbers=(((1,), (1,)), ((), ())),
        preferred_element_type=jnp.float32)
    out = out + b3_ref[0, 0]          # b3 is an SMEM scalar
    o_ref[...] = out.astype(o_ref.dtype)


def prepare_value_network_params(params, state_dim, compute_dtype=jnp.float32):
    """One-time conversion of PyTorch-layout params into kernel layout.

    Input (PyTorch convention): w1 (H, num_inputs), b1 (H,), w2 (H, H),
    b2 (H,), w3 (1, H), b3 (1,).
    Output: w1s (state_dim, H), w1a (action_dim, H), b1 (1, H),
            w2 (H, H) [in, out], b2 (1, H), w3 (1, H), b3 (1, 1).

    compute_dtype controls the MXU operand dtype (weights + in-kernel
    activation casts).  Use jnp.bfloat16 on v6e/v7x if hidden is scaled up;
    biases and accumulation stay f32 either way.
    Call once and cache; the forward path then has no per-call transpose /
    reshape XLA ops.
    """
    w1, b1, w2, b2, w3, b3 = params
    return (
        jnp.asarray(w1[:, :state_dim].T, compute_dtype),   # w1s (state_dim, H)
        jnp.asarray(w1[:, state_dim:].T, compute_dtype),   # w1a (action_dim, H)
        jnp.asarray(b1, jnp.float32).reshape(1, -1),
        jnp.asarray(w2.T, compute_dtype),                  # w2 (H, H) [in, out]
        jnp.asarray(b2, jnp.float32).reshape(1, -1),
        jnp.asarray(w3, compute_dtype).reshape(1, -1),     # w3 (1, H)
        jnp.asarray(b3, jnp.float32).reshape(1, 1),        # SMEM scalar
    )


def _pick_tile(B):
    """Choose the batch tile.

    Small batches: one grid point, tile == B (full-array block shapes, no
    padding; note this leaves one TensorCore idle on v7x -- unavoidable for a
    single tiny tile).
    Training batches (B >= 512): biggest tile in {2048,1024,512,256} that
    divides B while keeping >= 2 grid points so v7x can shard the parallel
    batch axis across its 2 TensorCores.  Falls back to 256 (+pad) only for
    batches not divisible by 256.
    """
    if B < 512:
        return B
    tile_b = 256
    for cand in (2048, 1024, 512, 256):
        if B % cand == 0 and B // cand >= 2:
            tile_b = cand
            break
    return tile_b


def value_network_forward(state, action, prepared_params, batch_size):
    """JAX wrapper mirroring ValueNetwork.forward(state, action, batch_size)."""
    w1s, w1a, b1, w2, b2, w3, b3 = prepared_params

    state = state.reshape(batch_size, -1).astype(jnp.float32)
    action = action.reshape(batch_size, -1).astype(jnp.float32)
    state_dim = state.shape[1]
    action_dim = action.shape[1]
    hidden = w2.shape[1]

    # Guard against silent W1 column misassignment (see correctness review).
    assert state_dim == w1s.shape[0], (state_dim, w1s.shape)
    assert action_dim == w1a.shape[0], (action_dim, w1a.shape)

    B = batch_size
    tile_b = _pick_tile(B)
    b_pad = _round_up(B, tile_b)
    if b_pad != B:
        # Only reached for batches not divisible by any candidate tile
        # (never for power-of-two training batches or the small-batch path).
        pad = b_pad - B
        state = jnp.pad(state, ((0, pad), (0, 0)))
        action = jnp.pad(action, ((0, pad), (0, 0)))

    grid = (b_pad // tile_b,)

    def full(shape):
        return pl.BlockSpec(shape, lambda i: (0, 0))

    out = pl.pallas_call(
        value_net_kernel,
        out_shape=jax.ShapeDtypeStruct((1, b_pad), jnp.float32),
        grid=grid,
        in_specs=[
            pl.BlockSpec((tile_b, state_dim), lambda i: (i, 0)),
            pl.BlockSpec((tile_b, action_dim), lambda i: (i, 0)),
            full((state_dim, hidden)),
            full((action_dim, hidden)),
            full((1, hidden)),
            full((hidden, hidden)),
            full((1, hidden)),
            full((1, hidden)),
            pl.BlockSpec(memory_space=pltpu.MemorySpace.SMEM),  # b3 scalar
        ],
        # Lane-dense output: one (1, tile_b) slab per grid step.
        out_specs=pl.BlockSpec((1, tile_b), lambda i: (0, i)),
        compiler_params=pltpu.CompilerParams(
            dimension_semantics=("parallel",),
            vmem_limit_bytes=32 * 1024 * 1024,
        ),
    )(state, action, w1s, w1a, b1, w2, b2, w3, b3)

    # (1, b_pad) -> (B, 1); pure layout op in the wrapper.
    out = out.reshape(b_pad, 1)
    if b_pad != B:
        out = out[:B]
    return out


def init_value_network_params(key, num_inputs, hidden_size, init_w=0.1):
    """Deterministic synthetic init matching the PyTorch module's shapes.

    linear1/linear2: PyTorch default Linear init ~ U(-1/sqrt(fan_in), 1/sqrt(fan_in))
    linear3: U(-init_w, init_w) for both weight and bias (as in the module).
    Weight shapes follow the PyTorch convention (out_features, in_features).
    """
    k1, k2, k3, k4, k5, k6 = jax.random.split(key, 6)

    bound1 = 1.0 / jnp.sqrt(num_inputs)
    w1 = jax.random.uniform(k1, (hidden_size, num_inputs), jnp.float32, -bound1, bound1)
    b1 = jax.random.uniform(k2, (hidden_size,), jnp.float32, -bound1, bound1)

    bound2 = 1.0 / jnp.sqrt(hidden_size)
    w2 = jax.random.uniform(k3, (hidden_size, hidden_size), jnp.float32, -bound2, bound2)
    b2 = jax.random.uniform(k4, (hidden_size,), jnp.float32, -bound2, bound2)

    w3 = jax.random.uniform(k5, (1, hidden_size), jnp.float32, -init_w, init_w)
    b3 = jax.random.uniform(k6, (1,), jnp.float32, -init_w, init_w)

    return (w1, b1, w2, b2, w3, b3)


def _reference_forward(state, action, params, batch_size):
    """Pure-JAX reference of the PyTorch forward for correctness check."""
    w1, b1, w2, b2, w3, b3 = params
    x = jnp.concatenate(
        [state.reshape(batch_size, -1), action.reshape(batch_size, -1)], axis=1
    ).astype(jnp.float32)
    x = jax.nn.leaky_relu(x @ w1.T + b1, LEAKY_SLOPE)
    x = jax.nn.leaky_relu(x @ w2.T + b2, LEAKY_SLOPE)
    return x @ w3.T + b3


if __name__ == "__main__":
    # Small shapes implied by forward(): state (B, state_dim), action (B, action_dim)
    batch_size = 2
    state_dim = 12
    action_dim = 4
    num_inputs = state_dim + action_dim  # 16
    hidden_size = 32

    key = jax.random.PRNGKey(0)
    k_params, k_state, k_action = jax.random.split(key, 3)

    params = init_value_network_params(k_params, num_inputs, hidden_size, init_w=0.1)
    prepared = prepare_value_network_params(params, state_dim)  # one-time layout conversion

    state = jax.random.normal(k_state, (batch_size, state_dim), jnp.float32)
    action = jax.random.normal(k_action, (batch_size, action_dim), jnp.float32)

    out = value_network_forward(state, action, prepared, batch_size)
    out = jax.block_until_ready(out)

    ref = _reference_forward(state, action, params, batch_size)
    assert out.shape == (batch_size, 1), out.shape
    assert jnp.allclose(out, ref, atol=1e-5, rtol=1e-5), (out, ref)

    print("KERNEL_OK")
</pallas_src>

<mosaic_0001>
module attributes {stable_mosaic.version = 11 : i64} {
  func.func @value_net_kernel(%arg0: i32, %arg1: memref<2x12xf32, #tpu.memory_space<vmem>>, %arg2: memref<2x4xf32, #tpu.memory_space<vmem>>, %arg3: memref<12x32xf32, #tpu.memory_space<vmem>>, %arg4: memref<4x32xf32, #tpu.memory_space<vmem>>, %arg5: memref<1x32xf32, #tpu.memory_space<vmem>>, %arg6: memref<32x32xf32, #tpu.memory_space<vmem>>, %arg7: memref<1x32xf32, #tpu.memory_space<vmem>>, %arg8: memref<1x32xf32, #tpu.memory_space<vmem>>, %arg9: memref<1x1xf32, #tpu.memory_space<smem>>, %arg10: memref<1x2xf32, #tpu.memory_space<vmem>>) attributes {dimension_semantics = [#tpu.dimension_semantics<parallel>], iteration_bounds = array<i64: 1>, scalar_prefetch = 0 : i64, scratch_operands = 0 : i64, tpu.core_type = #tpu.core_type<tc>, window_params = [{transform_indices = @transform_0, window_bounds = array<i64: 2, 12>}, {transform_indices = @transform_1, window_bounds = array<i64: 2, 4>}, {pipeline_mode = #tpu.pipeline_mode<synchronous>, transform_indices = @transform_2, window_bounds = array<i64: 12, 32>}, {pipeline_mode = #tpu.pipeline_mode<synchronous>, transform_indices = @transform_3, window_bounds = array<i64: 4, 32>}, {pipeline_mode = #tpu.pipeline_mode<synchronous>, transform_indices = @transform_4, window_bounds = array<i64: 1, 32>}, {pipeline_mode = #tpu.pipeline_mode<synchronous>, transform_indices = @transform_5, window_bounds = array<i64: 32, 32>}, {pipeline_mode = #tpu.pipeline_mode<synchronous>, transform_indices = @transform_6, window_bounds = array<i64: 1, 32>}, {pipeline_mode = #tpu.pipeline_mode<synchronous>, transform_indices = @transform_7, window_bounds = array<i64: 1, 32>}, {transform_indices = @transform_8, window_bounds = array<i64: 1, 1>}, {transform_indices = @transform_9, window_bounds = array<i64: 1, 2>}]} {
    %c0 = arith.constant 0 : index
    %c0_0 = arith.constant 0 : index
    %0 = vector.load %arg1[%c0, %c0_0] : memref<2x12xf32, #tpu.memory_space<vmem>>, vector<2x12xf32>
    %c0_1 = arith.constant 0 : index
    %c0_2 = arith.constant 0 : index
    %1 = vector.load %arg3[%c0_1, %c0_2] : memref<12x32xf32, #tpu.memory_space<vmem>>, vector<12x32xf32>
    %cst = arith.constant dense<0.000000e+00> : vector<2x32xf32>
    %2 = tpu.matmul %0, %1, %cst {dimension_numbers = #tpu.dot_dimension_numbers<[1], [0], [0], [1], [0, 0, 1, 1], [], []>} : vector<2x12xf32>, vector<12x32xf32>, vector<2x32xf32> -> vector<2x32xf32>
    %c0_3 = arith.constant 0 : index
    %c0_4 = arith.constant 0 : index
    %3 = vector.load %arg2[%c0_3, %c0_4] : memref<2x4xf32, #tpu.memory_space<vmem>>, vector<2x4xf32>
    %c0_5 = arith.constant 0 : index
    %c0_6 = arith.constant 0 : index
    %4 = vector.load %arg4[%c0_5, %c0_6] : memref<4x32xf32, #tpu.memory_space<vmem>>, vector<4x32xf32>
    %cst_7 = arith.constant dense<0.000000e+00> : vector<2x32xf32>
    %5 = tpu.matmul %3, %4, %cst_7 {dimension_numbers = #tpu.dot_dimension_numbers<[1], [0], [0], [1], [0, 0, 1, 1], [], []>} : vector<2x4xf32>, vector<4x32xf32>, vector<2x32xf32> -> vector<2x32xf32>
    %6 = arith.addf %2, %5 : vector<2x32xf32>
    %c0_8 = arith.constant 0 : index
    %c0_9 = arith.constant 0 : index
    %7 = vector.load %arg5[%c0_8, %c0_9] : memref<1x32xf32, #tpu.memory_space<vmem>>, vector<1x32xf32>
    %8 = vector.broadcast %7 : vector<1x32xf32> to vector<2x32xf32>
    %9 = arith.addf %6, %8 : vector<2x32xf32>
    %cst_10 = arith.constant 0.000000e+00 : f32
    %10 = vector.broadcast %cst_10 : f32 to vector<2x32xf32>
    %11 = arith.cmpf ogt, %9, %10 : vector<2x32xf32>
    %cst_11 = arith.constant 0.00999999977 : f32
    %12 = vector.broadcast %cst_11 : f32 to vector<2x32xf32>
    %13 = arith.mulf %12, %9 : vector<2x32xf32>
    %14 = arith.select %11, %9, %13 : vector<2x32xi1>, vector<2x32xf32>
    %c0_12 = arith.constant 0 : index
    %c0_13 = arith.constant 0 : index
    %15 = vector.load %arg6[%c0_12, %c0_13] : memref<32x32xf32, #tpu.memory_space<vmem>>, vector<32x32xf32>
    %cst_14 = arith.constant dense<0.000000e+00> : vector<2x32xf32>
    %16 = tpu.matmul %14, %15, %cst_14 {dimension_numbers = #tpu.dot_dimension_numbers<[1], [0], [0], [1], [0, 0, 1, 1], [], []>} : vector<2x32xf32>, vector<32x32xf32>, vector<2x32xf32> -> vector<2x32xf32>
    %c0_15 = arith.constant 0 : index
    %c0_16 = arith.constant 0 : index
    %17 = vector.load %arg7[%c0_15, %c0_16] : memref<1x32xf32, #tpu.memory_space<vmem>>, vector<1x32xf32>
    %18 = vector.broadcast %17 : vector<1x32xf32> to vector<2x32xf32>
    %19 = arith.addf %16, %18 : vector<2x32xf32>
    %cst_17 = arith.constant 0.000000e+00 : f32
    %20 = vector.broadcast %cst_17 : f32 to vector<2x32xf32>
    %21 = arith.cmpf ogt, %19, %20 : vector<2x32xf32>
    %cst_18 = arith.constant 0.00999999977 : f32
    %22 = vector.broadcast %cst_18 : f32 to vector<2x32xf32>
    %23 = arith.mulf %22, %19 : vector<2x32xf32>
    %24 = arith.select %21, %19, %23 : vector<2x32xi1>, vector<2x32xf32>
    %c0_19 = arith.constant 0 : index
    %c0_20 = arith.constant 0 : index
    %25 = vector.load %arg8[%c0_19, %c0_20] : memref<1x32xf32, #tpu.memory_space<vmem>>, vector<1x32xf32>
    %cst_21 = arith.constant dense<0.000000e+00> : vector<1x2xf32>
    %26 = tpu.matmul %25, %24, %cst_21 {dimension_numbers = #tpu.dot_dimension_numbers<[1], [1], [0], [0], [0, 0, 1, 0], [], []>} : vector<1x32xf32>, vector<2x32xf32>, vector<1x2xf32> -> vector<1x2xf32>
    %c0_22 = arith.constant 0 : index
    %c0_23 = arith.constant 0 : index
    %27 = memref.load %arg9[%c0_22, %c0_23] : memref<1x1xf32, #tpu.memory_space<smem>>
    %28 = vector.broadcast %27 : f32 to vector<1x2xf32>
    %29 = arith.addf %26, %28 : vector<1x2xf32>
    %c0_24 = arith.constant 0 : index
    %c0_25 = arith.constant 0 : index
    %30 = vector.load %arg10[%c0_24, %c0_25] : memref<1x2xf32, #tpu.memory_space<vmem>>, vector<1x2xf32>
    tpu.vector_store %arg10[%c0_24, %c0_25], %29 {strides = array<i32>} : memref<1x2xf32, #tpu.memory_space<vmem>>, vector<1x2xf32>,
    return
  }
  func.func @transform_0(%arg0: i32) -> (i32, i32) {
    %c0_i32 = arith.constant 0 : i32
    %c0_i32_0 = arith.constant 0 : i32
    return %arg0, %c0_i32 : i32, i32
  }
  func.func @transform_1(%arg0: i32) -> (i32, i32) {
    %c0_i32 = arith.constant 0 : i32
    %c0_i32_0 = arith.constant 0 : i32
    return %arg0, %c0_i32 : i32, i32
  }
  func.func @transform_2(%arg0: i32) -> (i32, i32) {
    %c0_i32 = arith.constant 0 : i32
    %c0_i32_0 = arith.constant 0 : i32
    %c0_i32_1 = arith.constant 0 : i32
    return %c0_i32, %c0_i32_0 : i32, i32
  }
  func.func @transform_3(%arg0: i32) -> (i32, i32) {
    %c0_i32 = arith.constant 0 : i32
    %c0_i32_0 = arith.constant 0 : i32
    %c0_i32_1 = arith.constant 0 : i32
    return %c0_i32, %c0_i32_0 : i32, i32
  }
  func.func @transform_4(%arg0: i32) -> (i32, i32) {
    %c0_i32 = arith.constant 0 : i32
    %c0_i32_0 = arith.constant 0 : i32
    %c0_i32_1 = arith.constant 0 : i32
    return %c0_i32, %c0_i32_0 : i32, i32
  }
  func.func @transform_5(%arg0: i32) -> (i32, i32) {
    %c0_i32 = arith.constant 0 : i32
    %c0_i32_0 = arith.constant 0 : i32
    %c0_i32_1 = arith.constant 0 : i32
    return %c0_i32, %c0_i32_0 : i32, i32
  }
  func.func @transform_6(%arg0: i32) -> (i32, i32) {
    %c0_i32 = arith.constant 0 : i32
    %c0_i32_0 = arith.constant 0 : i32
    %c0_i32_1 = arith.constant 0 : i32
    return %c0_i32, %c0_i32_0 : i32, i32
  }
  func.func @transform_7(%arg0: i32) -> (i32, i32) {
    %c0_i32 = arith.constant 0 : i32
    %c0_i32_0 = arith.constant 0 : i32
    %c0_i32_1 = arith.constant 0 : i32
    return %c0_i32, %c0_i32_0 : i32, i32
  }
  func.func @transform_8(%arg0: i32) -> (i32, i32) {
    %c0_i32 = arith.constant 0 : i32
    %c0_i32_0 = arith.constant 0 : i32
    %c0_i32_1 = arith.constant 0 : i32
    return %c0_i32, %c0_i32_0 : i32, i32
  }
  func.func @transform_9(%arg0: i32) -> (i32, i32) {
    %c0_i32 = arith.constant 0 : i32
    %c0_i32_0 = arith.constant 0 : i32
    return %c0_i32, %arg0 : i32, i32
  }
}

</mosaic_0001>

<bundles_post_ra>
// kernel: tpu_custom_call.1
= control target key start
LH: loop header
LB: loop body
LE: loop exit
PB: predicated region body
PF: predicated region fallthrough
CT: control target
= control target key end

     0   :  { %15 = vsyncpa [#allocation4], 0  ;;  %s664_s0 = inlined_call_operand.vmem [shape: f32[2,12], index: 0, kind: input, shape index: {}]   ;;  %s665_s1 = inlined_call_operand.hbm [shape: f32[2,4], index: 1, kind: input, shape index: {}]   ;;  %s666_s2 = inlined_call_operand.hbm [shape: f32[12,32], index: 2, kind: input, shape index: {}]   ;;  %s667_s3 = inlined_call_operand.vmem [shape: f32[4,32], index: 3, kind: input, shape index: {}]   ;;  %s668_s4 = inlined_call_operand.vmem [shape: f32[1,32], index: 4, kind: input, shape index: {}]   ;;  %s669_s5 = inlined_call_operand.hbm [shape: f32[32,32], index: 5, kind: input, shape index: {}]   ;;  %s670_s6 = inlined_call_operand.vmem [shape: f32[1,32], index: 6, kind: input, shape index: {}]   ;;  %s671_s7 = inlined_call_operand.vmem [shape: f32[1,32], index: 7, kind: input, shape index: {}]   ;;  %s672_s8 = inlined_call_operand.<no memory space> [shape: f32[1,1], index: 8, kind: input, shape index: {}]   ;;  %s673_s9 = inlined_call_operand.hbm [shape: f32[1,2], index: 9, kind: output, shape index: {}]  }
   0x1   :  { %16 = vsyncpa [#allocation7], 0 }
   0x2   :  { %17 = vsyncpa [#allocation5], 0  ;;  %s572_s30 = smov [#allocation6]  }
   0x3   :  { %s35_s10 = sshll.u32 %s572_s30, 4  ;;  %s36_s10 = int_to_ptr.vmem [resolvable:$true] %s35_s10 }
   0x4   :  { %s494_s11 = scalar_lea.vmem %s36_s10, 256  ;;  %p499_p1 = scmp.lt.s32.totalorder %s36_s10, %s36_s10 }
   0x5   :  { %p495_p0 = scmp.ne.s32.totalorder %s36_s10, %s494_s11  ;;  %p500_p2 = scmp.lt.s32.totalorder %s494_s11, %s494_s11 }
   0x7   :  { %p501_p3 = por %p500_p2, %p499_p1 }
   0x9   :  { %p502_p4 = pnand %p501_p3, %p495_p0 }
   0xb   :  { %505 = shalt.err (!%p502_p4)
}
   0xc   :  { %s573_s12 = smov 128   ;;  %s574_s13 = smov 8  }
   0xd   :  { %41 = dma.hbm_to_vmem [thread:$0]  %s666_s2, 256, %s36_s10, [#allocation7], %s573_s12, %s573_s12, %s574_s13  }
   0xe   :  { %s575_s16 = smov [#allocation3]   ;;  %s576_s18 = smov [#allocation8]  }
   0xf   :  { %s26_s17 = sshll.u32 %s575_s16, 4  ;;  %s51_s19 = sshll.u32 %s576_s18, 4  ;;  %s27_s17 = int_to_ptr.vmem [resolvable:$true] %s26_s17  ;;  %s52_s19 = int_to_ptr.vmem [resolvable:$true] %s51_s19 }
  0x10   :  { %s514_s20 = scalar_lea.vmem %s27_s17, 32  ;;  %p519_p6 = scmp.lt.s32.totalorder %s27_s17, %s27_s17 }
  0x11   :  { %p515_p5 = scmp.ne.s32.totalorder %s27_s17, %s514_s20  ;;  %p520_p7 = scmp.lt.s32.totalorder %s514_s20, %s514_s20 }
  0x13   :  { %p521_p8 = por %p520_p7, %p519_p6 }
  0x15   :  { %p522_p9 = pnand %p521_p8, %p515_p5 }
  0x17   :  { %525 = shalt.err (!%p522_p9)
}
  0x18   :  { %29 = dma.hbm_to_vmem [thread:$0]  %s665_s1, 32, %s27_s17, [#allocation4]  }
  0x19   :  { %s534_s23 = scalar_lea.vmem %s52_s19, 512  ;;  %p539_p11 = scmp.lt.s32.totalorder %s52_s19, %s52_s19 }
  0x1a   :  { %p535_p10 = scmp.ne.s32.totalorder %s52_s19, %s534_s23  ;;  %p540_p12 = scmp.lt.s32.totalorder %s534_s23, %s534_s23 }
  0x1c   :  { %p541_p13 = por %p540_p12, %p539_p11 }
  0x1e   :  { %p542_p0 = pnand %p541_p13, %p535_p10 }
  0x20   :  { %545 = shalt.err (!%p542_p0)
}
  0x21   :  { %57 = dma.hbm_to_vmem [thread:$0]  %s669_s5, 512, %s52_s19, [#allocation7], %s573_s12, %s573_s12, %s574_s13  }
  0x22   :  { %566 = dma.done.wait [#allocation4], 32  }
  0x23   :  { %567 = vsyncadd [#allocation4], 4294967264 }
  0x24   :  { %568 = dma.done.wait [#allocation7], 768  }
  0x25   :  { %569 = vsyncadd [#allocation7], 4294966528  ;;  %v577_v0 = vmov 0.0   ;;  %vm578_vm0 = vmmov 0   ;;  %vm82_vm1 = vcmask 1043456   ;;  %vm78_vm2 = vcmask 31744  }
  0x26   :  { %450 = vmatprep.subr.mxu0 %v577_v0  ;;  %455 = vmatprep.subr.mxu1 %v577_v0  ;;  %v77_v1 = vld [vmem:[%s667_s3] sm:$0xf]  ;;  %v75_v2 = vld [vmem:[#allocation6 + $0x8] sm:$0xf]  ;;  %vm156_vm3 = vcmask 97280   ;;  %v244_v9 = vld [vmem:[#allocation8] sm:$0xff]  ;;  %v334_v26 = vstv %s672_s8 }
  0x27   :  { %452 = vmatprep.mubr.msk.f32.mxu0 %vm578_vm0, %v577_v0  ;;  %459 = vmatprep.mubr.msk.f32.mxu1 %vm578_vm0, %v577_v0  ;;  %v76_v3 = vld [vmem:[#allocation3] sm:$0x3]  ;;  %v74_v4 = vld [vmem:[#allocation6] sm:$0xff]  ;;  %v247_v6 = vld [vmem:[#allocation8 + $0x18] sm:$0xff]  ;;  %vm255_vm5 = vcmask 261120   ;;  %s579_s11 = smov [#allocation9]  }
  0x28   :  { %451 = vmatpush3.msk.msra.mxu0 %vm82_vm1, %v77_v1  ;;  %456 = vmatpush3.msk.msra.mxu1 %vm82_vm1, %v75_v2  ;;  %v73_v5 = vld [vmem:[%s664_s0] sm:$0x3]  ;;  %v246_v7 = vld [vmem:[#allocation8 + $0x10] sm:$0xff]  ;;  %s419_s12 = sshll.u32 %s579_s11, 4  ;;  %vm411_vm7 = vcmask 8192   ;;  %s420_s12 = int_to_ptr.vmem [resolvable:$true] %s419_s12 }
  0x29   :  { %453 = vmatmul.mubr.msk.f32.vlgmr.msra.gmra.mxu0 %vm78_vm2, %v76_v3  ;;  %457 = vmatprep.subr.mxu1 %v577_v0  ;;  %v245_v8 = vld [vmem:[#allocation8 + $0x8] sm:$0xff]  ;;  %s550_s13 = scalar_lea.vmem %s420_s12, 32  ;;  %p551_p2 = scmp.lt.s32.totalorder %s420_s12, %s420_s12 }
  0x2a   :  { %458 = vmatpush3.msra.mxu1 %v74_v4  ;;  %462 = vmatprep.subr.mxu0 %v577_v0  ;;  %v433_v13 = vld [vmem:[%s668_s4] ss:$0 sm:$0xff] }
  0x2b   :  { %460 = vmatmul.mubr.msk.f32.vlgmr.msra.gmra.mxu1 %vm156_vm3, %v73_v5  ;;  %470 = vmatprep.mubr.msk.f32.mxu0 %vm578_vm0, %v577_v0  ;;  %v434_v19 = vld [vmem:[%s670_s6] ss:$0 sm:$0xff]  ;;  %s546_s6 = scalar_lea.vmem %s420_s12, 16 }
  0x2c   :  { %473 = vmatprep.subr.mxu1 %v577_v0  ;;  %475 = vmatprep.mubr.msk.f32.mxu1 %vm578_vm0, %v577_v0  ;;  %v332_v25 = vld [vmem:[%s671_s7] sm:$0x1]  ;;  %p547_p1 = scmp.ne.s32.totalorder %s420_s12, %s546_s6  ;;  %p552_p3 = scmp.lt.s32.totalorder %s550_s13, %s546_s6 }
  0x2d   :  { %463 = vmatpush3.msra.mxu0 %v247_v6 }
  0x2e   :  { %464 = vmatprep.subr.mxu0 %v577_v0  ;;  %p553_p4 = por %p552_p3, %p551_p2 }
  0x2f   :  { %465 = vmatpush3.msra.mxu0 %v246_v7 }
  0x30   :  { %466 = vmatprep.subr.mxu0 %v577_v0  ;;  %p554_p5 = pnand %p553_p4, %p547_p1 }
  0x31   :  { %467 = vmatpush3.msra.mxu0 %v245_v8 }
  0x32   :  { %468 = vmatprep.subr.mxu0 %v577_v0 }
  0x33   :  { %469 = vmatpush3.msra.mxu0 %v244_v9 }
  0xe9   :  { %v152_v10 = vpop.f32.mrf.mxu0 }
  0xeb   :  { %v454_v11 = vpop.f32.mrf.mxu0  ;;  %v229_v12 = vpop.f32.mrf.mxu1 }
  0xec   :  { %v230_v14 = vadd.f32 %v229_v12, %v152_v10 }
  0xed   :  { %v461_v15 = vpop.f32.mrf.mxu1 }
  0xee   :  { %v240_v16 = vadd.f32 %v433_v13, %v230_v14 }
  0xf0   :  { %vm241_vm4 = vcmp.gt.f32.partialorder %v240_v16, 0.0  ;;  %v242_v17 = vmul.f32 0.01, %v240_v16 }
  0xf2   :  { %v243_v18 = vsel %vm241_vm4, %v240_v16, %v242_v17 }
  0xf3   :  { %471 = vmatmul.mubr.msk.f32.vlgmr.msra.gmra.mxu0 %vm255_vm5, %v243_v18 }
 0x1b3   :  { %v325_v20 = vpop.f32.mrf.mxu0 }
 0x1b4   :  { %v326_v21 = vadd.f32 %v434_v19, %v325_v20 }
 0x1b5   :  { %v472_v22 = vpop.f32.mrf.mxu0 }
 0x1b6   :  { %vm329_vm6 = vcmp.gt.f32.partialorder %v326_v21, 0.0  ;;  %v330_v23 = vmul.f32 0.01, %v326_v21 }
 0x1b8   :  { %v331_v24 = vsel %vm329_vm6, %v326_v21, %v330_v23 }
 0x1b9   :  { %474 = vmatpush3.xpose.msk.msra.mxu1 %vm255_vm5, %v331_v24 }
 0x1bc   :  { %476 = vmatmul.mubr.msk.f32.vlgmr.msra.gmra.mxu1 %vm255_vm5, %v332_v25 }
 0x27c   :  { %v407_v27 = vpop.f32.mrf.mxu1 }
 0x27d   :  { %v408_v28 = vadd.f32 %v407_v27, %v334_v26 }
 0x27e   :  { %v477_v29 = vpop.f32.mrf.mxu1 }
 0x27f   :  { %412 = vst.msk [vmem:[#allocation9] sm:$0x1] %vm411_vm7, %v408_v28 }
 0x280   :  { %557 = shalt.err (!%p554_p5)
}
 0x281   :  { %422 = dma.vmem_to_hbm [thread:$0]  %s420_s12, 16, %s673_s9, [#allocation5]  }
 0x282   :  { %570 = dma.done.wait [#allocation5], 16  }
 0x283   :  { %571 = vsyncadd [#allocation5], 4294967280 }
 0x284   :  { %426 = vsyncpa [#allocation4], 1 }
 0x285   :  { %427 = vsyncpa [#allocation7], 1 }
 0x286   :  { %428 = vsyncpa [#allocation5], 1 }

</bundles_post_ra>
